<compile_context>
chip_gen: v7x
topology: tpu7x:2x2x1
jax: 0.10.0
libtpu: 0.0.40
codegen_flags: <defaults>
</compile_context>

<pallas_src>
import functools

import jax
import jax.numpy as jnp
from jax.experimental import pallas as pl
from jax.experimental.pallas import tpu as pltpu


# ----------------------------------------------------------------------------
# Pallas tiled matmul kernels (bf16 operands, f32 accumulation, optional
# fused bias / relu epilogue)
# ----------------------------------------------------------------------------
def _mm_kernel_single_k(a_ref, b_ref, bias_ref, o_ref, *, apply_relu):
    # Whole K fits in one block: compute and store directly (no accumulator
    # readback, no zero-init pass).
    r = jnp.dot(a_ref[...], b_ref[...],
                preferred_element_type=jnp.float32) + bias_ref[...]
    if apply_relu:
        r = jnp.maximum(r, 0.0)
    o_ref[...] = r


def _mm_kernel_multi_k(a_ref, b_ref, bias_ref, o_ref, *, apply_relu):
    @pl.when(pl.program_id(2) == 0)
    def _():
        o_ref[...] = jnp.zeros_like(o_ref)

    o_ref[...] += jnp.dot(a_ref[...], b_ref[...],
                          preferred_element_type=jnp.float32)

    @pl.when(pl.program_id(2) == pl.num_programs(2) - 1)
    def _():
        r = o_ref[...] + bias_ref[...]          # epilogue stays in f32
        if apply_relu:
            r = jnp.maximum(r, 0.0)
        o_ref[...] = r


def _round_up(v, m):
    return ((v + m - 1) // m) * m


def pallas_matmul(a, b, bias=None, apply_relu=False):
    """a: (M, K), b: (K, N), bias: (N,)/(1, N)/None -> (M, N) float32.

    Operands are fed to the MXU in bf16; accumulation is f32.
    """
    a = a.astype(jnp.bfloat16)
    b = b.astype(jnp.bfloat16)
    M, K = a.shape
    K2, N = b.shape
    assert K == K2, (K, K2)
    if bias is None:
        bias = jnp.zeros((N,), jnp.float32)
    bias = bias.reshape(1, N).astype(jnp.float32)

    # bf16 sublane tile is 16 -> round M tiles to 16; lanes to 128.
    tm = 512 if M >= 512 else _round_up(M, 16)
    tk = min(256, _round_up(K, 128))
    tn = min(256, _round_up(N, 128))
    Mp, Kp, Np = _round_up(M, tm), _round_up(K, tk), _round_up(N, tn)

    # Skip pad/slice HBM copies when the shapes already line up.
    if (Mp, Kp) != (M, K):
        a = jnp.pad(a, ((0, Mp - M), (0, Kp - K)))
    if (Kp, Np) != (K, N):
        b = jnp.pad(b, ((0, Kp - K), (0, Np - N)))
    if Np != N:
        bias = jnp.pad(bias, ((0, 0), (0, Np - N)))

    if Kp == tk:
        # Single-K fast path (covers every matmul in this model at these
        # shapes): 2-D grid, direct store, fused bias/ReLU.
        grid = (Mp // tm, Np // tn)
        out = pl.pallas_call(
            functools.partial(_mm_kernel_single_k, apply_relu=apply_relu),
            out_shape=jax.ShapeDtypeStruct((Mp, Np), jnp.float32),
            grid_spec=pltpu.PrefetchScalarGridSpec(
                num_scalar_prefetch=0,
                grid=grid,
                in_specs=[
                    pl.BlockSpec((tm, Kp), lambda i, j: (i, 0)),
                    pl.BlockSpec((Kp, tn), lambda i, j: (0, j)),
                    pl.BlockSpec((1, tn), lambda i, j: (0, j)),
                ],
                out_specs=pl.BlockSpec((tm, tn), lambda i, j: (i, j)),
            ),
            compiler_params=pltpu.CompilerParams(
                dimension_semantics=("parallel", "parallel")),
        )(a, b, bias)
    else:
        grid = (Mp // tm, Np // tn, Kp // tk)
        out = pl.pallas_call(
            functools.partial(_mm_kernel_multi_k, apply_relu=apply_relu),
            out_shape=jax.ShapeDtypeStruct((Mp, Np), jnp.float32),
            grid_spec=pltpu.PrefetchScalarGridSpec(
                num_scalar_prefetch=0,
                grid=grid,
                in_specs=[
                    pl.BlockSpec((tm, tk), lambda i, j, k: (i, k)),
                    pl.BlockSpec((tk, tn), lambda i, j, k: (k, j)),
                    pl.BlockSpec((1, tn), lambda i, j, k: (0, j)),
                ],
                out_specs=pl.BlockSpec((tm, tn), lambda i, j, k: (i, j)),
            ),
            compiler_params=pltpu.CompilerParams(
                dimension_semantics=("parallel", "parallel", "arbitrary")),
        )(a, b, bias)

    if (Mp, Np) != (M, N):
        out = out[:M, :N]
    return out


# ----------------------------------------------------------------------------
# Conv / pool / BN building blocks -- channel-last (N, L, C) end-to-end, so
# im2col needs no transposes and matmul outputs are lane-dense.
# ----------------------------------------------------------------------------
def conv1d_cl(x, w, stride=1, padding=0, bias=None):
    """x: (N, L, C) channel-last, w: (Cout, Cin, k) -> (N, L_out, Cout)."""
    N, L, C = x.shape
    Cout, Cin, k = w.shape
    assert Cin == C, (Cin, C)
    if padding:
        x = jnp.pad(x, ((0, 0), (padding, padding), (0, 0)))
    L_out = (L + 2 * padding - k) // stride + 1
    idx = stride * jnp.arange(L_out)[:, None] + jnp.arange(k)[None, :]
    patches = x[:, idx, :].reshape(N * L_out, k * C)          # cols = tap*C+cin
    wmat = jnp.transpose(w, (2, 1, 0)).reshape(k * C, Cout)   # rows = tap*C+cin
    out = pallas_matmul(patches, wmat, bias=bias)
    return out.reshape(N, L_out, Cout)


def conv2d_stem_cl(x, w, stride=2, pad_w=3):
    """Conv2d(1, nf, (kh, 7), stride=2, padding=(0,3), bias=False), channel-last.

    x: (N, W, kh) -- input height == kernel height so output height is 1
    (mirrors torch.squeeze in the reference).  Returns (N, W_out, nf)."""
    N, W, kh = x.shape
    nf, _, kh_w, kw = w.shape
    assert kh == kh_w, "input height must equal kernel_height for squeeze()"
    x_pad = jnp.pad(x, ((0, 0), (pad_w, pad_w), (0, 0)))
    W_out = (W + 2 * pad_w - kw) // stride + 1
    idx = stride * jnp.arange(W_out)[:, None] + jnp.arange(kw)[None, :]
    patches = x_pad[:, idx, :].reshape(N * W_out, kw * kh)    # cols = j*kh+h
    wmat = jnp.transpose(w[:, 0], (2, 1, 0)).reshape(kw * kh, nf)
    out = pallas_matmul(patches, wmat)
    return out.reshape(N, W_out, nf)


def maxpool1d_cl(x):
    """MaxPool1d(kernel=3, stride=2, padding=1) on channel-last (N, L, C)."""
    N, L, C = x.shape
    x_pad = jnp.pad(x, ((0, 0), (1, 1), (0, 0)), constant_values=-jnp.inf)
    L_out = (L + 2 - 3) // 2 + 1
    idx = 2 * jnp.arange(L_out)[:, None] + jnp.arange(3)[None, :]
    return x_pad[:, idx, :].max(axis=2)


def bn_relu_cl(x, gamma, beta, B, T, residual=None, relu=True, eps=1e-5):
    """Training-mode BatchNorm1d with per-timestep batch stats (exactly like
    calling batch_norm1 on each x_t in the PyTorch loop), fused with the
    optional residual add and ReLU.

    x: (B*T, L, C) channel-last.  Stats are over (batch, length) per (t, c).
    One-pass E[x]/E[x^2] reduction + one fused elementwise pass (XLA fuses the
    normalize/affine/add/relu chain into a single HBM round trip)."""
    BT, L, C = x.shape
    x4 = x.reshape(B, T, L, C)
    mean = x4.mean(axis=(0, 2), keepdims=True)
    var = jnp.maximum(
        (x4 * x4).mean(axis=(0, 2), keepdims=True) - mean * mean, 0.0)
    scale = gamma[None, None, None, :] * jax.lax.rsqrt(var + eps)
    shift = beta[None, None, None, :] - mean * scale
    y = x4 * scale + shift
    if residual is not None:
        y = y + residual.reshape(B, T, L, C)
    if relu:
        y = jnp.maximum(y, 0.0)
    return y.reshape(BT, L, C)


def basic_block(x, p, B, T):
    """Standard 1D BasicBlock (expansion = 1), channel-last."""
    stride = p["stride"]
    out = conv1d_cl(x, p["conv1_w"], stride=stride, padding=1)
    out = bn_relu_cl(out, p["bn1_g"], p["bn1_b"], B, T, relu=True)
    out = conv1d_cl(out, p["conv2_w"], stride=1, padding=1)
    if "ds_w" in p:
        identity = conv1d_cl(x, p["ds_w"], stride=stride, padding=0,
                             bias=p["ds_b"])
        identity = bn_relu_cl(identity, p["ds_bn_g"], p["ds_bn_b"], B, T,
                              relu=False)
    else:
        identity = x
    # bn2 + residual add + final ReLU fused into one elementwise pass.
    return bn_relu_cl(out, p["bn2_g"], p["bn2_b"], B, T,
                      residual=identity, relu=True)


# ----------------------------------------------------------------------------
# LSTM: hoisted input projection + single-pallas_call recurrence
# ----------------------------------------------------------------------------
def _lstm_kernel(xg_ref, whh_ref, o_ref, h_ref, c_ref):
    t = pl.program_id(0)
    H = h_ref.shape[1]

    @pl.when(t == 0)
    def _():
        h_ref[...] = jnp.zeros_like(h_ref)
        c_ref[...] = jnp.zeros_like(c_ref)

    # Recurrent projection on the MXU: bf16 operands, f32 accumulation.
    gates = xg_ref[0] + jnp.dot(h_ref[...].astype(jnp.bfloat16), whh_ref[...],
                                preferred_element_type=jnp.float32)
    i = jax.nn.sigmoid(gates[:, 0 * H:1 * H])      # PyTorch gate order i,f,g,o
    f = jax.nn.sigmoid(gates[:, 1 * H:2 * H])
    g = jnp.tanh(gates[:, 2 * H:3 * H])
    o = jax.nn.sigmoid(gates[:, 3 * H:4 * H])
    c_new = f * c_ref[...] + i * g
    h_new = o * jnp.tanh(c_new)
    c_ref[...] = c_new
    h_ref[...] = h_new
    o_ref[...] = h_new     # resident output block; only the last value lands


def lstm_last_hidden(x_seq, p):
    """Single-layer batch_first LSTM; returns h at the last time step."""
    B, T, F = x_seq.shape
    H = p["w_hh"].shape[1]
    # Input projection for ALL timesteps as one matmul (M = B*T).
    xg = pallas_matmul(x_seq.reshape(B * T, F), p["w_ih"].T,
                       bias=p["b_ih"] + p["b_hh"])
    xg = xg.reshape(B, T, 4 * H).transpose(1, 0, 2)            # (T, B, 4H)
    w_hh_t = p["w_hh"].T.astype(jnp.bfloat16)                  # (H, 4H), bf16

    return pl.pallas_call(
        _lstm_kernel,
        out_shape=jax.ShapeDtypeStruct((B, H), jnp.float32),
        grid_spec=pltpu.PrefetchScalarGridSpec(
            num_scalar_prefetch=0,
            grid=(T,),
            in_specs=[
                pl.BlockSpec((1, B, 4 * H), lambda t: (t, 0, 0)),
                pl.BlockSpec((H, 4 * H), lambda t: (0, 0)),   # VMEM-resident
            ],
            out_specs=pl.BlockSpec((B, H), lambda t: (0, 0)),
            scratch_shapes=[pltpu.VMEM((B, H), jnp.float32),   # h
                            pltpu.VMEM((B, H), jnp.float32)],  # c
        ),
        compiler_params=pltpu.CompilerParams(
            dimension_semantics=("arbitrary",)),
    )(xg, w_hh_t)


# ----------------------------------------------------------------------------
# Full forward pass
# ----------------------------------------------------------------------------
def resnet_lstm_forward(x, params):
    """x: (B, T, kernel_height, W)  ->  (B, 1000)."""
    B, T, kh, W = x.shape
    # Per-frame conv is shared, so fold time into batch; go channel-last once.
    xt = x.reshape(B * T, kh, W).transpose(0, 2, 1)          # (B*T, W, kh)
    y = conv2d_stem_cl(xt, params["conv1_w"])                # (B*T, W', nf)
    y = bn_relu_cl(y, params["bn1_g"], params["bn1_b"], B, T, relu=True)
    y = maxpool1d_cl(y)
    for layer in params["layers"]:
        for bp in layer:
            y = basic_block(y, bp, B, T)
    feat = y.mean(axis=1)                                    # AdaptiveAvgPool1d(1)
    feat = feat.reshape(B, T, -1)                            # torch.stack(dim=1)
    h_last = lstm_last_hidden(feat, params["lstm"])          # lstm -> x[:, -1, :]
    return pallas_matmul(h_last, params["fc_w"].T, bias=params["fc_b"])


# ----------------------------------------------------------------------------
# Deterministic parameter init (BasicBlock, expansion = 1)
# ----------------------------------------------------------------------------
def init_params(key, num_blocks_list, num_filters, kernel_height,
                hidden_size=256, num_classes=1000):
    expansion = 1
    keys = iter(jax.random.split(key, 256))

    def nrm(shape, scale=0.05):
        return scale * jax.random.normal(next(keys), shape, jnp.float32)

    params = {
        "conv1_w": nrm((num_filters, 1, kernel_height, 7)),
        "bn1_g": jnp.ones((num_filters,), jnp.float32),
        "bn1_b": jnp.zeros((num_filters,), jnp.float32),
    }
    in_c = num_filters
    layers = []
    planes_list = [num_filters, 2 * num_filters, 4 * num_filters,
                   8 * num_filters]
    for li, (nb, planes) in enumerate(zip(num_blocks_list, planes_list)):
        layer_stride = 1 if li == 0 else 2
        blocks = []
        for bi in range(nb):
            s = layer_stride if bi == 0 else 1
            bp = {
                "stride": s,
                "conv1_w": nrm((planes, in_c, 3)),
                "bn1_g": jnp.ones((planes,), jnp.float32),
                "bn1_b": jnp.zeros((planes,), jnp.float32),
                "conv2_w": nrm((planes, planes, 3)),
                "bn2_g": jnp.ones((planes,), jnp.float32),
                "bn2_b": jnp.zeros((planes,), jnp.float32),
            }
            if s != 1 or in_c != planes * expansion:
                bp["ds_w"] = nrm((planes * expansion, in_c, 1))
                bp["ds_b"] = nrm((planes * expansion,))
                bp["ds_bn_g"] = jnp.ones((planes * expansion,), jnp.float32)
                bp["ds_bn_b"] = jnp.zeros((planes * expansion,), jnp.float32)
            blocks.append(bp)
            in_c = planes * expansion
        layers.append(blocks)
    params["layers"] = layers

    feat = 8 * num_filters * expansion  # == 512*expansion when num_filters=64
    params["lstm"] = {
        "w_ih": nrm((4 * hidden_size, feat)),
        "w_hh": nrm((4 * hidden_size, hidden_size)),
        "b_ih": nrm((4 * hidden_size,)),
        "b_hh": nrm((4 * hidden_size,)),
    }
    params["fc_w"] = nrm((num_classes, hidden_size))
    params["fc_b"] = nrm((num_classes,))
    return params


# ----------------------------------------------------------------------------
if __name__ == "__main__":
    B, T = 2, 4
    kernel_height = 8       # input height must equal kernel_height (squeeze)
    W = 64
    num_filters = 8
    num_blocks_list = [1, 1, 1, 1]

    key = jax.random.PRNGKey(0)
    k_x, k_p = jax.random.split(key)
    x = jax.random.normal(k_x, (B, T, kernel_height, W), jnp.float32)
    params = init_params(k_p, num_blocks_list, num_filters, kernel_height)

    out = resnet_lstm_forward(x, params)
    out = jax.block_until_ready(out)
    assert out.shape == (B, 1000), out.shape
    assert bool(jnp.all(jnp.isfinite(out)))
    print("KERNEL_OK")
</pallas_src>

<mosaic_0001>
module attributes {stable_mosaic.version = 11 : i64} {
  func.func @_mm_kernel_single_k(%arg0: i32, %arg1: i32, %arg2: memref<256x128xbf16, #tpu.memory_space<vmem>>, %arg3: memref<128x128xbf16, #tpu.memory_space<vmem>>, %arg4: memref<1x128xf32, #tpu.memory_space<vmem>>, %arg5: memref<256x128xf32, #tpu.memory_space<vmem>>) attributes {dimension_semantics = [#tpu.dimension_semantics<parallel>, #tpu.dimension_semantics<parallel>], iteration_bounds = array<i64: 1, 1>, scalar_prefetch = 0 : i64, scratch_operands = 0 : i64, tpu.core_type = #tpu.core_type<tc>, window_params = [{transform_indices = @transform_0, window_bounds = array<i64: 256, 128>}, {transform_indices = @transform_1, window_bounds = array<i64: 128, 128>}, {transform_indices = @transform_2, window_bounds = array<i64: 1, 128>}, {transform_indices = @transform_3, window_bounds = array<i64: 256, 128>}]} {
    %c0 = arith.constant 0 : index
    %c0_0 = arith.constant 0 : index
    %0 = vector.load %arg2[%c0, %c0_0] : memref<256x128xbf16, #tpu.memory_space<vmem>>, vector<256x128xbf16>
    %c0_1 = arith.constant 0 : index
    %c0_2 = arith.constant 0 : index
    %1 = vector.load %arg3[%c0_1, %c0_2] : memref<128x128xbf16, #tpu.memory_space<vmem>>, vector<128x128xbf16>
    %cst = arith.constant dense<0.000000e+00> : vector<256x128xf32>
    %2 = tpu.matmul %0, %1, %cst {dimension_numbers = #tpu.dot_dimension_numbers<[1], [0], [0], [1], [0, 0, 1, 1], [], []>} : vector<256x128xbf16>, vector<128x128xbf16>, vector<256x128xf32> -> vector<256x128xf32>
    %c0_3 = arith.constant 0 : index
    %c0_4 = arith.constant 0 : index
    %3 = vector.load %arg4[%c0_3, %c0_4] : memref<1x128xf32, #tpu.memory_space<vmem>>, vector<1x128xf32>
    %4 = vector.broadcast %3 : vector<1x128xf32> to vector<256x128xf32>
    %5 = arith.addf %2, %4 : vector<256x128xf32>
    %c0_5 = arith.constant 0 : index
    %c0_6 = arith.constant 0 : index
    %6 = vector.load %arg5[%c0_5, %c0_6] : memref<256x128xf32, #tpu.memory_space<vmem>>, vector<256x128xf32>
    tpu.vector_store %arg5[%c0_5, %c0_6], %5 {strides = array<i32>} : memref<256x128xf32, #tpu.memory_space<vmem>>, vector<256x128xf32>,
    return
  }
  func.func @transform_0(%arg0: i32, %arg1: i32) -> (i32, i32) {
    %c0_i32 = arith.constant 0 : i32
    %c0_i32_0 = arith.constant 0 : i32
    return %arg0, %c0_i32 : i32, i32
  }
  func.func @transform_1(%arg0: i32, %arg1: i32) -> (i32, i32) {
    %c0_i32 = arith.constant 0 : i32
    %c0_i32_0 = arith.constant 0 : i32
    return %c0_i32, %arg1 : i32, i32
  }
  func.func @transform_2(%arg0: i32, %arg1: i32) -> (i32, i32) {
    %c0_i32 = arith.constant 0 : i32
    %c0_i32_0 = arith.constant 0 : i32
    return %c0_i32, %arg1 : i32, i32
  }
  func.func @transform_3(%arg0: i32, %arg1: i32) -> (i32, i32) {
    %c0_i32 = arith.constant 0 : i32
    return %arg0, %arg1 : i32, i32
  }
}

</mosaic_0001>

<bundles_post_ra>
// kernel: tpu_custom_call.1
= control target key start
LH: loop header
LB: loop body
LE: loop exit
PB: predicated region body
PF: predicated region fallthrough
CT: control target
= control target key end

     0   :  { %8 = vsyncpa [#allocation3], 0  ;;  %s770_s0 = inlined_call_operand.hbm [shape: bf16[256,128], index: 0, kind: input, shape index: {}]   ;;  %s771_s1 = inlined_call_operand.hbm [shape: bf16[128,128], index: 1, kind: input, shape index: {}]   ;;  %s772_s2 = inlined_call_operand.vmem [shape: f32[1,128], index: 2, kind: input, shape index: {}]   ;;  %s773_s3 = inlined_call_operand.hbm [shape: f32[256,128], index: 3, kind: output, shape index: {}]  }
   0x1   :  { %9 = vsyncpa [#allocation6], 0 }
   0x2   :  { %10 = vsyncpa [#allocation4], 0  ;;  %s670_s12 = smov [#allocation2]   ;;  %s598_s16 = scalar_lea.hbm %s770_s0, 2048 }
   0x3   :  { %s16_s13 = sshll.u32 %s670_s12, 4  ;;  %p599_p0 = scmp.ne.s32.totalorder %s770_s0, %s598_s16  ;;  %s17_s13 = int_to_ptr.vmem [resolvable:$true] %s16_s13 }
   0x4   :  { %p602_p1 = scmp.lt.u32.totalorder %s598_s16, %s770_s0 }
   0x6   :  { %p604_p2 = pnand %p602_p1, %p599_p0 }
   0x8   :  { %607 = shalt.err (!%p604_p2)
}
   0x9   :  { %s608_s21 = scalar_lea.vmem %s17_s13, 2048  ;;  %p613_p4 = scmp.lt.s32.totalorder %s17_s13, %s17_s13 }
   0xa   :  { %p609_p3 = scmp.ne.s32.totalorder %s17_s13, %s608_s21  ;;  %p614_p5 = scmp.lt.s32.totalorder %s608_s21, %s608_s21 }
   0xc   :  { %p615_p6 = por %p614_p5, %p613_p4 }
   0xe   :  { %p616_p7 = pnand %p615_p6, %p609_p3 }
  0x10   :  { %619 = shalt.err (!%p616_p7)
}
  0x11   :  { %s671_s22 = smov 64   ;;  %s672_s23 = smov 4  }
  0x12   :  { %22 = dma.hbm_to_vmem [thread:$0]  %s770_s0, 2048, %s17_s13, [#allocation3], %s671_s22, %s671_s22, %s672_s23  }
  0x13   :  { %s673_s26 = smov [#allocation5]   ;;  %s620_s30 = scalar_lea.hbm %s771_s1, 1024 }
  0x14   :  { %s28_s27 = sshll.u32 %s673_s26, 4  ;;  %p621_p8 = scmp.ne.s32.totalorder %s771_s1, %s620_s30  ;;  %s29_s27 = int_to_ptr.vmem [resolvable:$true] %s28_s27 }
  0x15   :  { %p624_p9 = scmp.lt.u32.totalorder %s620_s30, %s771_s1 }
  0x17   :  { %p626_p10 = pnand %p624_p9, %p621_p8 }
  0x19   :  { %629 = shalt.err (!%p626_p10)
}
  0x1a   :  { %s630_s8 = scalar_lea.vmem %s29_s27, 1024  ;;  %p635_p12 = scmp.lt.s32.totalorder %s29_s27, %s29_s27 }
  0x1b   :  { %p631_p11 = scmp.ne.s32.totalorder %s29_s27, %s630_s8  ;;  %p636_p13 = scmp.lt.s32.totalorder %s630_s8, %s630_s8 }
  0x1d   :  { %p637_p0 = por %p636_p13, %p635_p12 }
  0x1f   :  { %p638_p1 = pnand %p637_p0, %p631_p11 }
  0x21   :  { %641 = shalt.err (!%p638_p1)
}
  0x22   :  { %34 = dma.hbm_to_vmem [thread:$0]  %s771_s1, 1024, %s29_s27, [#allocation6], %s671_s22, %s671_s22, %s672_s23  }
  0x23   :  { %664 = dma.done.wait [#allocation3], 2048  }
  0x24   :  { %665 = vsyncadd [#allocation3], 4294965248 }
  0x25   :  { %666 = dma.done.wait [#allocation6], 1024  }
  0x26   :  { %667 = vsyncadd [#allocation6], 4294966272  ;;  %v574_v0 = vld [vmem:[#allocation5] sm:$0xff]   ;;  %v575_v1 = vld [vmem:[#allocation5 + $0x8] sm:$0xff]  }
  0x27   :  { %503 = vmatprep.subr.bf16.mxu0 %v574_v0  ;;  %551 = vmatprep.subr.bf16.mxu1 %v574_v0  ;;  %v576_v2 = vld [vmem:[#allocation5 + $0x10] sm:$0xff]   ;;  %v577_v3 = vld [vmem:[#allocation5 + $0x18] sm:$0xff]   ;;  %v582_v4 = vld [vmem:[#allocation2] sm:$0xff]  }
  0x28   :  { %504 = vmatpush3.bf16.msra.mxu0 %v574_v0  ;;  %559 = vmatpush3.bf16.msra.mxu1 %v574_v0  ;;  %v583_v5 = vld [vmem:[#allocation2 + $0x40] sm:$0xff]   ;;  %v579_v7 = vld [vmem:[#allocation5 + $0x28] sm:$0xff]   ;;  %v580_v8 = vld [vmem:[#allocation5 + $0x30] sm:$0xff]  }
  0x29   :  { %505 = vmatprep.subr.bf16.mxu0 %v575_v1  ;;  %552 = vmatprep.subr.bf16.mxu1 %v575_v1  ;;  %v578_v6 = vld [vmem:[#allocation5 + $0x20] sm:$0xff]   ;;  %v581_v9 = vld [vmem:[#allocation5 + $0x38] sm:$0xff]   ;;  %v584_v10 = vld [vmem:[#allocation2 + $0x8] sm:$0xff]  }
  0x2a   :  { %519 = vmatprep.mubr.bf16.mxu0 %v582_v4  ;;  %535 = vmatprep.mubr.bf16.mxu1 %v583_v5  ;;  %v585_v11 = vld [vmem:[#allocation2 + $0x48] sm:$0xff]   ;;  %v586_v12 = vld [vmem:[#allocation2 + $0x10] sm:$0xff]   ;;  %v588_v14 = vld [vmem:[#allocation2 + $0x18] sm:$0xff]  }
  0x2b   :  { %v587_v13 = vld [vmem:[#allocation2 + $0x50] sm:$0xff]   ;;  %v589_v15 = vld [vmem:[#allocation2 + $0x58] sm:$0xff]   ;;  %v590_v16 = vld [vmem:[#allocation2 + $0x20] sm:$0xff]  }
  0x2c   :  { %506 = vmatpush3.bf16.msra.mxu0 %v575_v1  ;;  %560 = vmatpush3.bf16.msra.mxu1 %v575_v1  ;;  %v591_v17 = vld [vmem:[#allocation2 + $0x60] sm:$0xff]   ;;  %v592_v18 = vld [vmem:[#allocation2 + $0x28] sm:$0xff]   ;;  %v594_v20 = vld [vmem:[#allocation2 + $0x30] sm:$0xff]  }
  0x2d   :  { %507 = vmatprep.subr.bf16.mxu0 %v576_v2  ;;  %553 = vmatprep.subr.bf16.mxu1 %v576_v2  ;;  %v593_v19 = vld [vmem:[#allocation2 + $0x68] sm:$0xff]   ;;  %v595_v21 = vld [vmem:[#allocation2 + $0x70] sm:$0xff]   ;;  %v596_v22 = vld [vmem:[#allocation2 + $0x38] sm:$0xff]  }
  0x2e   :  { %v597_v23 = vld [vmem:[#allocation2 + $0x78] sm:$0xff]   ;;  %v724_v24 = vld [vmem:[%s772_s2] ss:$0 sm:$0xff]  ;;  %s674_s2 = smov [#allocation7]  }
  0x2f   :  { %s441_s11 = sshll.u32 %s674_s2, 4  ;;  %s442_s11 = int_to_ptr.vmem [resolvable:$true] %s441_s11 }
  0x30   :  { %508 = vmatpush3.bf16.msra.mxu0 %v576_v2  ;;  %561 = vmatpush3.bf16.msra.mxu1 %v576_v2  ;;  %s642_s12 = scalar_lea.vmem %s442_s11, 4096  ;;  %p647_p3 = scmp.lt.s32.totalorder %s442_s11, %s442_s11 }
  0x31   :  { %509 = vmatprep.subr.bf16.mxu0 %v577_v3  ;;  %554 = vmatprep.subr.bf16.mxu1 %v577_v3  ;;  %p643_p2 = scmp.ne.s32.totalorder %s442_s11, %s642_s12  ;;  %p648_p4 = scmp.lt.s32.totalorder %s642_s12, %s642_s12 }
  0x33   :  { %p649_p5 = por %p648_p4, %p647_p3 }
  0x34   :  { %510 = vmatpush3.bf16.msra.mxu0 %v577_v3  ;;  %562 = vmatpush3.bf16.msra.mxu1 %v577_v3 }
  0x35   :  { %511 = vmatprep.subr.bf16.mxu0 %v578_v6  ;;  %555 = vmatprep.subr.bf16.mxu1 %v578_v6  ;;  %p650_p6 = pnand %p649_p5, %p643_p2 }
  0x38   :  { %512 = vmatpush3.bf16.msra.mxu0 %v578_v6  ;;  %563 = vmatpush3.bf16.msra.mxu1 %v578_v6 }
  0x39   :  { %513 = vmatprep.subr.bf16.mxu0 %v579_v7  ;;  %556 = vmatprep.subr.bf16.mxu1 %v579_v7 }
  0x3c   :  { %514 = vmatpush3.bf16.msra.mxu0 %v579_v7  ;;  %564 = vmatpush3.bf16.msra.mxu1 %v579_v7 }
  0x3d   :  { %515 = vmatprep.subr.bf16.mxu0 %v580_v8  ;;  %557 = vmatprep.subr.bf16.mxu1 %v580_v8 }
  0x40   :  { %516 = vmatpush3.bf16.msra.mxu0 %v580_v8  ;;  %565 = vmatpush3.bf16.msra.mxu1 %v580_v8 }
  0x41   :  { %517 = vmatprep.subr.bf16.mxu0 %v581_v9  ;;  %558 = vmatprep.subr.bf16.mxu1 %v581_v9 }
  0x44   :  { %518 = vmatpush3.bf16.msra.mxu0 %v581_v9  ;;  %566 = vmatpush3.bf16.msra.mxu1 %v581_v9 }
  0x47   :  { %520 = vmatmul.mubr.bf16.vlgmr.msra.gmra.mrb[0].mxu0 %v584_v10  ;;  %536 = vmatmul.mubr.bf16.vlgmr.msra.gmra.mrb[0].mxu1 %v585_v11 }
  0x48   :  { %523 = vmatprep.mubr.bf16.mxu0 %v586_v12  ;;  %539 = vmatprep.mubr.bf16.mxu1 %v587_v13 }
  0x4f   :  { %524 = vmatmul.mubr.bf16.gmra.mrb[4].mxu0 %v588_v14  ;;  %540 = vmatmul.mubr.bf16.gmra.mrb[4].mxu1 %v589_v15 }
  0x50   :  { %527 = vmatprep.mubr.bf16.mxu0 %v590_v16  ;;  %543 = vmatprep.mubr.bf16.mxu1 %v591_v17 }
  0x57   :  { %528 = vmatmul.mubr.bf16.gmra.mrb[8].mxu0 %v592_v18  ;;  %544 = vmatmul.mubr.bf16.gmra.mrb[8].mxu1 %v593_v19 }
  0x58   :  { %531 = vmatprep.mubr.bf16.mxu0 %v594_v20  ;;  %547 = vmatprep.mubr.bf16.mxu1 %v595_v21 }
  0x5f   :  { %532 = vmatmul.mubr.bf16.gmra.mrb[12].mxu0 %v596_v22  ;;  %548 = vmatmul.mubr.bf16.gmra.mrb[12].mxu1 %v597_v23 }
 0x11a   :  { %v521_v25 = vpop.f32.mrb[0].mxu0  ;;  %v537_v26 = vpop.f32.mrb[0].mxu1 }
 0x11b   :  { %v286_v27 = vadd.f32 %v521_v25, %v724_v24  ;;  %v350_v28 = vadd.f32 %v537_v26, %v724_v24  ;;  %v277_v29 = vpop.f32.mrb[1].mxu0  ;;  %v341_v30 = vpop.f32.mrb[1].mxu1 }
 0x11c   :  { %v278_v31 = vadd.f32 %v724_v24, %v277_v29  ;;  %v342_v32 = vadd.f32 %v724_v24, %v341_v30  ;;  %v522_v33 = vpop.f32.mrb[2].mxu0  ;;  %v538_v34 = vpop.f32.mrb[2].mxu1 }
 0x11d   :  { %406 = vst [vmem:[#allocation7 + $0x10] sm:$0xff] %v286_v27  ;;  %422 = vst [vmem:[#allocation7 + $0x90] sm:$0xff] %v350_v28  ;;  %v289_v35 = vadd.f32 %v522_v33, %v724_v24  ;;  %v353_v36 = vadd.f32 %v538_v34, %v724_v24  ;;  %v280_v37 = vpop.f32.mrb[3].mxu0  ;;  %v344_v38 = vpop.f32.mrb[3].mxu1 }
 0x11e   :  { %404 = vst [vmem:[#allocation7] sm:$0xff] %v278_v31  ;;  %420 = vst [vmem:[#allocation7 + $0x80] sm:$0xff] %v342_v32  ;;  %v281_v39 = vadd.f32 %v724_v24, %v280_v37  ;;  %v345_v40 = vadd.f32 %v724_v24, %v344_v38 }
 0x11f   :  { %407 = vst [vmem:[#allocation7 + $0x18] sm:$0xff] %v289_v35  ;;  %423 = vst [vmem:[#allocation7 + $0x98] sm:$0xff] %v353_v36 }
 0x120   :  { %405 = vst [vmem:[#allocation7 + $0x8] sm:$0xff] %v281_v39  ;;  %421 = vst [vmem:[#allocation7 + $0x88] sm:$0xff] %v345_v40 }
 0x122   :  { %v525_v41 = vpop.f32.mrb[4].mxu0  ;;  %v541_v42 = vpop.f32.mrb[4].mxu1 }
 0x123   :  { %v302_v43 = vadd.f32 %v525_v41, %v724_v24  ;;  %v366_v44 = vadd.f32 %v541_v42, %v724_v24  ;;  %v293_v45 = vpop.f32.mrb[5].mxu0  ;;  %v357_v46 = vpop.f32.mrb[5].mxu1 }
 0x124   :  { %v294_v47 = vadd.f32 %v724_v24, %v293_v45  ;;  %v358_v48 = vadd.f32 %v724_v24, %v357_v46  ;;  %v526_v49 = vpop.f32.mrb[6].mxu0  ;;  %v542_v50 = vpop.f32.mrb[6].mxu1 }
 0x125   :  { %410 = vst [vmem:[#allocation7 + $0x30] sm:$0xff] %v302_v43  ;;  %426 = vst [vmem:[#allocation7 + $0xb0] sm:$0xff] %v366_v44  ;;  %v305_v51 = vadd.f32 %v526_v49, %v724_v24  ;;  %v369_v52 = vadd.f32 %v542_v50, %v724_v24  ;;  %v296_v53 = vpop.f32.mrb[7].mxu0  ;;  %v360_v54 = vpop.f32.mrb[7].mxu1 }
 0x126   :  { %408 = vst [vmem:[#allocation7 + $0x20] sm:$0xff] %v294_v47  ;;  %424 = vst [vmem:[#allocation7 + $0xa0] sm:$0xff] %v358_v48  ;;  %v297_v55 = vadd.f32 %v724_v24, %v296_v53  ;;  %v361_v56 = vadd.f32 %v724_v24, %v360_v54 }
 0x127   :  { %411 = vst [vmem:[#allocation7 + $0x38] sm:$0xff] %v305_v51  ;;  %427 = vst [vmem:[#allocation7 + $0xb8] sm:$0xff] %v369_v52 }
 0x128   :  { %409 = vst [vmem:[#allocation7 + $0x28] sm:$0xff] %v297_v55  ;;  %425 = vst [vmem:[#allocation7 + $0xa8] sm:$0xff] %v361_v56 }
 0x12a   :  { %v529_v57 = vpop.f32.mrb[8].mxu0  ;;  %v545_v58 = vpop.f32.mrb[8].mxu1 }
 0x12b   :  { %v318_v59 = vadd.f32 %v529_v57, %v724_v24  ;;  %v382_v60 = vadd.f32 %v545_v58, %v724_v24  ;;  %v309_v61 = vpop.f32.mrb[9].mxu0  ;;  %v373_v62 = vpop.f32.mrb[9].mxu1 }
 0x12c   :  { %v310_v63 = vadd.f32 %v724_v24, %v309_v61  ;;  %v374_v0 = vadd.f32 %v724_v24, %v373_v62  ;;  %v530_v1 = vpop.f32.mrb[10].mxu0  ;;  %v546_v2 = vpop.f32.mrb[10].mxu1 }
 0x12d   :  { %414 = vst [vmem:[#allocation7 + $0x50] sm:$0xff] %v318_v59  ;;  %430 = vst [vmem:[#allocation7 + $0xd0] sm:$0xff] %v382_v60  ;;  %v321_v3 = vadd.f32 %v530_v1, %v724_v24  ;;  %v385_v4 = vadd.f32 %v546_v2, %v724_v24  ;;  %v312_v5 = vpop.f32.mrb[11].mxu0  ;;  %v376_v6 = vpop.f32.mrb[11].mxu1 }
 0x12e   :  { %412 = vst [vmem:[#allocation7 + $0x40] sm:$0xff] %v310_v63  ;;  %428 = vst [vmem:[#allocation7 + $0xc0] sm:$0xff] %v374_v0  ;;  %v313_v7 = vadd.f32 %v724_v24, %v312_v5  ;;  %v377_v8 = vadd.f32 %v724_v24, %v376_v6 }
 0x12f   :  { %415 = vst [vmem:[#allocation7 + $0x58] sm:$0xff] %v321_v3  ;;  %431 = vst [vmem:[#allocation7 + $0xd8] sm:$0xff] %v385_v4 }
 0x130   :  { %413 = vst [vmem:[#allocation7 + $0x48] sm:$0xff] %v313_v7  ;;  %429 = vst [vmem:[#allocation7 + $0xc8] sm:$0xff] %v377_v8 }
 0x132   :  { %v533_v9 = vpop.f32.mrb[12].mxu0  ;;  %v549_v10 = vpop.f32.mrb[12].mxu1 }
 0x133   :  { %v334_v11 = vadd.f32 %v533_v9, %v724_v24  ;;  %v398_v12 = vadd.f32 %v549_v10, %v724_v24  ;;  %v325_v13 = vpop.f32.mrb[13].mxu0  ;;  %v389_v14 = vpop.f32.mrb[13].mxu1 }
 0x134   :  { %v326_v15 = vadd.f32 %v724_v24, %v325_v13  ;;  %v390_v16 = vadd.f32 %v724_v24, %v389_v14  ;;  %v534_v17 = vpop.f32.mrb[14].mxu0  ;;  %v550_v18 = vpop.f32.mrb[14].mxu1 }
 0x135   :  { %418 = vst [vmem:[#allocation7 + $0x70] sm:$0xff] %v334_v11  ;;  %434 = vst [vmem:[#allocation7 + $0xf0] sm:$0xff] %v398_v12  ;;  %v337_v19 = vadd.f32 %v534_v17, %v724_v24  ;;  %v401_v20 = vadd.f32 %v550_v18, %v724_v24  ;;  %v328_v21 = vpop.f32.mrb[15].mxu0  ;;  %v392_v22 = vpop.f32.mrb[15].mxu1 }
 0x136   :  { %416 = vst [vmem:[#allocation7 + $0x60] sm:$0xff] %v326_v15  ;;  %432 = vst [vmem:[#allocation7 + $0xe0] sm:$0xff] %v390_v16  ;;  %v329_v23 = vadd.f32 %v724_v24, %v328_v21  ;;  %v393_v25 = vadd.f32 %v724_v24, %v392_v22 }
 0x137   :  { %419 = vst [vmem:[#allocation7 + $0x78] sm:$0xff] %v337_v19  ;;  %435 = vst [vmem:[#allocation7 + $0xf8] sm:$0xff] %v401_v20 }
 0x138   :  { %417 = vst [vmem:[#allocation7 + $0x68] sm:$0xff] %v329_v23  ;;  %433 = vst [vmem:[#allocation7 + $0xe8] sm:$0xff] %v393_v25 }
 0x139   :  { %653 = shalt.err (!%p650_p6)
}
 0x13a   :  { %s654_s15 = scalar_lea.hbm %s773_s3, 4096 }
 0x13b   :  { %p655_p7 = scmp.ne.s32.totalorder %s773_s3, %s654_s15  ;;  %p658_p8 = scmp.lt.u32.totalorder %s654_s15, %s773_s3 }
 0x13d   :  { %p660_p9 = pnand %p658_p8, %p655_p7 }
 0x13f   :  { %663 = shalt.err (!%p660_p9)
}
 0x140   :  { %s675_s20 = smov 128   ;;  %s676_s21 = smov 8  }
 0x141   :  { %447 = dma.vmem_to_hbm [thread:$0]  %s442_s11, 4096, %s773_s3, [#allocation4], %s675_s20, %s675_s20, %s676_s21  }
 0x142   :  { %668 = dma.done.wait [#allocation4], 4096  }
 0x143   :  { %669 = vsyncadd [#allocation4], 4294963200 }
 0x144   :  { %451 = vsyncpa [#allocation3], 1 }
 0x145   :  { %452 = vsyncpa [#allocation6], 1 }
 0x146   :  { %453 = vsyncpa [#allocation4], 1 }

</bundles_post_ra>
